<compile_context>
chip_gen: v6e
topology: v6e:2x2x1
jax: 0.10.0
libtpu: 0.0.40
codegen_flags: <defaults>
</compile_context>

<pallas_src>
import jax
import jax.numpy as jnp
from jax import lax
from jax.experimental import pallas as pl
from jax.experimental.pallas import tpu as pltpu


def _round_up(x, m):
    return ((x + m - 1) // m) * m


def _round_down(x, m):
    return (x // m) * m


def _vmem_capacity_bytes():
    """Physical VMEM per TensorCore; falls back to the smallest current part."""
    try:
        cap = getattr(pltpu.get_tpu_info(), "vmem_capacity_bytes", None)
        if cap:
            return int(cap)
    except Exception:
        pass
    return 64 * 1024 * 1024  # conservative: v7x per-TC VMEM


# ------------------------------- kernels ----------------------------------- #


def _embed_onehot_kernel(ids_ref, table_ref, out_ref):
    """Small-vocab gather on the MXU: out = one_hot(ids) @ table.

    ids_ref   : VMEM int32 (T, 1)
    table_ref : VMEM (vocab, d_model)  resident (constant block index)
    out_ref   : VMEM (T, d_model)
    """
    T = out_ref.shape[0]
    vocab = table_ref.shape[0]
    cols = lax.broadcasted_iota(jnp.int32, (T, vocab), 1)
    one_hot = (cols == ids_ref[...]).astype(table_ref.dtype)
    out_ref[...] = jnp.dot(
        one_hot, table_ref[...], preferred_element_type=jnp.float32
    ).astype(out_ref.dtype)


def _embed_resident_batched_kernel(ids_ref, table_ref, out_ref, row8_ref):
    """Mid-size resident table: gather 8 rows at a time, store sublane-dense.

    ids_ref   : SMEM int32 (T,)
    table_ref : VMEM (vocab, d_model)
    out_ref   : VMEM (T, d_model)
    row8_ref  : VMEM (8, d_model) staging for one sublane-dense store
    """
    T = out_ref.shape[0]

    def outer(g, carry):
        base = pl.multiple_of(g * 8, 8)

        def inner(j, c):
            idx = ids_ref[base + j]
            row8_ref[pl.ds(j, 1), :] = table_ref[pl.ds(idx, 1), :]
            return c

        lax.fori_loop(0, 8, inner, 0, unroll=True)
        out_ref[pl.ds(base, 8), :] = row8_ref[...]
        return carry

    lax.fori_loop(0, T // 8, outer, 0)


def _embed_hbm_gather_kernel(ids_ref, table_hbm_ref, out_ref, copy_sems):
    """Large table: DMA each row straight from HBM into the output block.

    ids_ref       : SMEM int32 (T,)
    table_hbm_ref : ANY/HBM (vocab, d_model)  never copied wholesale to VMEM
    out_ref       : VMEM (T, d_model)  DMA destinations; no staging buffer
    copy_sems     : DMA semaphores (depth,) -> `depth` row-DMAs in flight
    """
    T = out_ref.shape[0]
    depth = copy_sems.shape[0]

    def issue(t):
        idx = ids_ref[t]
        pltpu.make_async_copy(
            table_hbm_ref.at[pl.ds(idx, 1), :],
            out_ref.at[pl.ds(t, 1), :],
            copy_sems.at[t % depth],
        ).start()

    def drain(t):
        # wait() only consumes the semaphore for a dst-sized transfer; the
        # source slice (row 0) is a same-shaped placeholder (standard idiom).
        pltpu.make_async_copy(
            table_hbm_ref.at[pl.ds(0, 1), :],
            out_ref.at[pl.ds(t, 1), :],
            copy_sems.at[t % depth],
        ).wait()

    @pl.loop(0, depth)
    def _prologue(t):  # fill the ring
        issue(t)

    @pl.loop(depth, T)
    def _steady(t):  # wait oldest slot, reuse it for the next row
        drain(t - depth)
        issue(t)

    @pl.loop(T - depth, T)
    def _epilogue(t):  # drain remaining in-flight copies
        drain(t)


# ------------------------------- wrapper ----------------------------------- #


def io_embedding(x, embed_table, *, tile_tokens=1024, dma_depth=32,
                 onehot_vocab_limit=2048, gather_mode="auto"):
    """Pallas equivalent of nn.Embedding(vocab, d_model)(x).

    x           : integer token ids, any shape.
    embed_table : [vocab, d_model] float table.
    gather_mode : "auto" | "onehot" | "batched" | "hbm" (forcing is for tests).
    Returns an array of shape x.shape + (d_model,) with embed_table's dtype.
    """
    orig_shape = tuple(x.shape)
    vocab, d_model = embed_table.shape
    dtype = embed_table.dtype
    itemsize = jnp.dtype(dtype).itemsize

    # NOTE: nn.Embedding errors on out-of-range ids; we clamp for robustness.
    ids = jnp.clip(x.reshape(-1).astype(jnp.int32), 0, vocab - 1)
    n_tokens = int(ids.shape[0])

    # ---- generation-dependent budgets ----
    vmem_cap = _vmem_capacity_bytes()
    big_vmem = vmem_cap >= 96 * 1024 * 1024            # v5e / v6e (128 MiB parts)
    vmem_limit_cap = (100 if big_vmem else 52) * 1024 * 1024
    tile_byte_cap = (4 if big_vmem else 2) * 1024 * 1024

    # ---- token tile ----
    bytes_per_row = d_model * itemsize
    rows_cap = max(8, _round_down(tile_byte_cap // bytes_per_row, 8))
    n_ru8 = _round_up(max(n_tokens, 1), 8)
    T = max(8, _round_down(min(int(tile_tokens), n_ru8, rows_cap), 8))
    # Ensure >= 2 grid steps when possible so v7x's 2 TensorCores both get work.
    if n_ru8 >= 16 and T >= n_ru8:
        T = max(8, _round_down(n_ru8 // 2, 8))

    n_pad = _round_up(max(n_tokens, 1), T)
    n_tiles = n_pad // T
    ids_p = jnp.pad(ids, (0, n_pad - n_tokens))  # pad with id 0; rows sliced off

    # ---- path selection ----
    table_bytes = vocab * d_model * itemsize
    out_tile_bytes = T * d_model * itemsize
    # Resident paths currently double-buffer the (constant-index) table block.
    # TODO(synk): use pipeline_mode=pl.Buffered(1) on the constant table block to
    # halve resident-table VMEM once single-buffered BlockSpecs are safe everywhere.
    need_onehot = 2 * table_bytes + 2 * out_tile_bytes + T * vocab * 4 + (4 << 20)
    need_batched = 2 * table_bytes + 2 * out_tile_bytes + 8 * bytes_per_row + (4 << 20)
    need_hbm = 2 * out_tile_bytes + (2 << 20)
    # Only keep a big table VMEM-resident if the gather amortizes the one-time load.
    amortized = table_bytes <= max(4 << 20, 4 * n_tokens * bytes_per_row)

    mode = gather_mode
    if mode == "auto":
        if vocab <= onehot_vocab_limit and need_onehot <= vmem_limit_cap and amortized:
            mode = "onehot"
        elif need_batched <= vmem_limit_cap and amortized:
            mode = "batched"
        else:
            mode = "hbm"

    out_spec = pl.BlockSpec((T, d_model), lambda t: (t, 0))

    if mode == "onehot":
        kernel = _embed_onehot_kernel
        ids_arg = ids_p.reshape(n_pad, 1)
        ids_spec = pl.BlockSpec((T, 1), lambda t: (t, 0))
        table_spec = pl.BlockSpec((vocab, d_model), lambda t: (0, 0))
        scratch_shapes = ()
        need = need_onehot
    elif mode == "batched":
        kernel = _embed_resident_batched_kernel
        ids_arg = ids_p
        ids_spec = pl.BlockSpec((T,), lambda t: (t,),
                                memory_space=pltpu.MemorySpace.SMEM)
        table_spec = pl.BlockSpec((vocab, d_model), lambda t: (0, 0))
        scratch_shapes = (pltpu.VMEM((8, d_model), dtype),)
        need = need_batched
    elif mode == "hbm":
        kernel = _embed_hbm_gather_kernel
        ids_arg = ids_p
        ids_spec = pl.BlockSpec((T,), lambda t: (t,),
                                memory_space=pltpu.MemorySpace.SMEM)
        table_spec = pl.BlockSpec(memory_space=pl.ANY)  # table stays in HBM
        depth = max(1, min(int(dma_depth), T))
        scratch_shapes = (pltpu.SemaphoreType.DMA((depth,)),)
        need = need_hbm
    else:
        raise ValueError(f"unknown gather_mode: {gather_mode!r}")

    vmem_limit = int(min(vmem_limit_cap, max(32 * 1024 * 1024, need)))

    out_flat = pl.pallas_call(
        kernel,
        out_shape=jax.ShapeDtypeStruct((n_pad, d_model), dtype),
        grid=(n_tiles,),
        in_specs=[ids_spec, table_spec],
        out_specs=out_spec,
        scratch_shapes=scratch_shapes,
        compiler_params=pltpu.CompilerParams(
            dimension_semantics=("parallel",),  # token tiles are independent
            vmem_limit_bytes=vmem_limit,
        ),
    )(ids_arg, embed_table)

    out = out_flat[:n_tokens]
    return out.reshape(orig_shape + (d_model,))


if __name__ == "__main__":
    # Small, deterministic setup consistent with IO_Embedding(vocab_size, d_model).
    vocab_size = 64
    d_model = 128
    B, S = 2, 8

    key = jax.random.PRNGKey(0)
    k_tbl, k_ids = jax.random.split(key)

    embed_table = jax.random.normal(k_tbl, (vocab_size, d_model), dtype=jnp.float32)
    x = jax.random.randint(k_ids, (B, S), minval=0, maxval=vocab_size, dtype=jnp.int32)

    ref = jnp.take(embed_table, x, axis=0)

    # Auto path (small vocab -> one-hot MXU gather from the resident table).
    out = jax.block_until_ready(io_embedding(x, embed_table))
    assert out.shape == (B, S, d_model), out.shape
    assert jnp.allclose(out, ref), "Pallas embedding (one-hot path) mismatch vs reference"

    # Mid-size resident path (8-row batched gather), forced on the same data.
    out_b = jax.block_until_ready(io_embedding(x, embed_table, gather_mode="batched"))
    assert out_b.shape == (B, S, d_model), out_b.shape
    assert jnp.allclose(out_b, ref), "Pallas embedding (batched path) mismatch vs reference"

    # Large-table path (direct HBM->out DMA ring), forced on the same data.
    out_h = jax.block_until_ready(io_embedding(x, embed_table, gather_mode="hbm"))
    assert out_h.shape == (B, S, d_model), out_h.shape
    assert jnp.allclose(out_h, ref), "Pallas embedding (HBM gather path) mismatch vs reference"

    print("KERNEL_OK")
</pallas_src>

<mosaic_0001>
module attributes {stable_mosaic.version = 11 : i64} {
  func.func @_embed_onehot_kernel(%arg0: i32, %arg1: memref<8x1xi32, #tpu.memory_space<vmem>>, %arg2: memref<64x128xf32, #tpu.memory_space<vmem>>, %arg3: memref<8x128xf32, #tpu.memory_space<vmem>>) attributes {dimension_semantics = [#tpu.dimension_semantics<parallel>], iteration_bounds = array<i64: 2>, scalar_prefetch = 0 : i64, scratch_operands = 0 : i64, tpu.core_type = #tpu.core_type<tc>, window_params = [{transform_indices = @transform_0, window_bounds = array<i64: 8, 1>}, {pipeline_mode = #tpu.pipeline_mode<synchronous>, transform_indices = @transform_1, window_bounds = array<i64: 64, 128>}, {transform_indices = @transform_2, window_bounds = array<i64: 8, 128>}]} {
    %0 = tpu.iota {dimensions = array<i32: 1>} : vector<8x64xi32>
    %c0 = arith.constant 0 : index
    %c0_0 = arith.constant 0 : index
    %1 = vector.load %arg1[%c0, %c0_0] : memref<8x1xi32, #tpu.memory_space<vmem>>, vector<8x1xi32>
    %2 = vector.broadcast %1 : vector<8x1xi32> to vector<8x64xi32>
    %3 = arith.cmpi eq, %0, %2 : vector<8x64xi32>
    %4 = arith.extui %3 : vector<8x64xi1> to vector<8x64xi32>
    %5 = arith.sitofp %4 : vector<8x64xi32> to vector<8x64xf32>
    %c0_1 = arith.constant 0 : index
    %c0_2 = arith.constant 0 : index
    %6 = vector.load %arg2[%c0_1, %c0_2] : memref<64x128xf32, #tpu.memory_space<vmem>>, vector<64x128xf32>
    %cst = arith.constant dense<0.000000e+00> : vector<8x128xf32>
    %7 = tpu.matmul %5, %6, %cst {dimension_numbers = #tpu.dot_dimension_numbers<[1], [0], [0], [1], [0, 0, 1, 1], [], []>} : vector<8x64xf32>, vector<64x128xf32>, vector<8x128xf32> -> vector<8x128xf32>
    %c0_3 = arith.constant 0 : index
    %c0_4 = arith.constant 0 : index
    %8 = vector.load %arg3[%c0_3, %c0_4] : memref<8x128xf32, #tpu.memory_space<vmem>>, vector<8x128xf32>
    tpu.vector_store %arg3[%c0_3, %c0_4], %7 {strides = array<i32>} : memref<8x128xf32, #tpu.memory_space<vmem>>, vector<8x128xf32>,
    return
  }
  func.func @transform_0(%arg0: i32) -> (i32, i32) {
    %c0_i32 = arith.constant 0 : i32
    %c0_i32_0 = arith.constant 0 : i32
    return %arg0, %c0_i32 : i32, i32
  }
  func.func @transform_1(%arg0: i32) -> (i32, i32) {
    %c0_i32 = arith.constant 0 : i32
    %c0_i32_0 = arith.constant 0 : i32
    %c0_i32_1 = arith.constant 0 : i32
    return %c0_i32, %c0_i32_0 : i32, i32
  }
  func.func @transform_2(%arg0: i32) -> (i32, i32) {
    %c0_i32 = arith.constant 0 : i32
    %c0_i32_0 = arith.constant 0 : i32
    return %arg0, %c0_i32 : i32, i32
  }
}

</mosaic_0001>

<bundles_post_ra>
// kernel: tpu_custom_call.1
= control target key start
LH: loop header
LB: loop body
LE: loop exit
PB: predicated region body
PF: predicated region fallthrough
CT: control target
= control target key end

     0   :  { %7 = vsyncpa [#allocation3], 0  ;;  %s660_s0 = inlined_call_operand.vmem [shape: s32[16,1], index: 0, kind: input, shape index: {}]   ;;  %s661_s1 = inlined_call_operand.hbm [shape: f32[64,128], index: 1, kind: input, shape index: {}]   ;;  %s662_s2 = inlined_call_operand.hbm [shape: f32[16,128], index: 2, kind: output, shape index: {}]  }
   0x1   :  { %8 = vsyncpa [#allocation4], 0 }
   0x2   :  { %10 = vsyncpa [#allocation4 + $0x1], 0  ;;  %s543_s9 = smov 0   ;;  %s545_s10 = smov 0  }
   0x3   :  { %s547_s11 = smov 0   ;;  %s549_s12 = smov 0  }
   0x4 LB: > { %s564_s13 = sadd.s32 4294967295, %s519_s12   ;;  %s331_s14 = sadd.s32 4294967294, %s519_s12   ;;  %s519_s12 = sphi %s549_s12, %s670_s12   ;;  %s515_s11 = sphi %s547_s11, %s669_s11   ;;  %s511_s10 = sphi %s545_s10, %s668_s10   ;;  %s507_s9 = sphi %s543_s9, %s667_s9  }
   0x5   : > { %s568_s15 = sadd.s32 1, %s519_s12   ;;  %s70_s16 = sadd.s32 1, %s515_s11 }
   0x6   : > { %s67_s17 = ssub.s32 %s519_s12, %s568_s15  ;;  %p80_p0 = scmp.ne.s32.totalorder %s515_s11, %s511_s10 }
   0x7   : > { %p68_p1 = scmp.eq.s32.totalorder %s67_s17, 0  ;;  %p81_p2 = scmp.eq.s32.totalorder %s564_s13, 1 }
   0x8   : > { %p86_p3 = scmp.ne.s32.totalorder %s511_s10, %s507_s9  ;;  %p87_p4 = scmp.eq.s32.totalorder %s331_s14, 1 }
   0x9   : > { %s579_s18 = scalar_select %p68_p1, %s515_s11, %s70_s16  }
   0xa   : > { %p581_p5 = por %p81_p2, %p80_p0  ;;  %p585_p6 = por %p87_p4, %p86_p3 }
   0xb   : > { %p332_p7 = scmp.ge.s32.totalorder %s519_s12, 1  ;;  %p94_p8 = scmp.lt.s32.totalorder %s519_s12, 3 }
   0xc   : > { %s664_s20 = scalar_select %p585_p6, 1, 0 }
   0xd   : > { %p387_p9 = scmp.eq.s32.totalorder %s564_s13, 0  ;;  %p592_p10 = pnand %p332_p7, %p94_p8 }
   0xe   : > { %s521_s22 = smov [#allocation2]  }
   0xf   : > { %s106_s23 = sshll.u32 %s521_s22, 4  ;;  %p379_p11 = pneg %p592_p10  ;;  %s107_s23 = int_to_ptr.vmem [resolvable:$true] %s106_s23 }
  0x10   : > { %s440_s24 = scalar_lea.vmem %s107_s23, 1024  ;;  %p448_p3 = scmp.lt.s32.totalorder %s107_s23, %s107_s23 }
  0x11   : > { %p380_p12 = pnand %p387_p9, %p379_p11  ;;  %p441_p0 = scmp.ne.s32.totalorder %s107_s23, %s440_s24 }
  0x12   : > { %p449_p4 = scmp.lt.s32.totalorder %s440_s24, %s440_s24 }
  0x13   : > { %p431_p13 = pneg %p380_p12 }
  0x14   : > { %p450_p6 = por %p449_p4, %p448_p3 }
  0x15   : > { %p443_p1 = pnand %p441_p0, %p431_p13 }
  0x17   : > { %p444_p2 = pneg %p443_p1 }
  0x19   : > { %p451_p7 = pnand %p450_p6, %p444_p2 }
  0x1b   : > { %454 = shalt.err (!%p451_p7)
}
  0x1c   : > { %s522_s25 = smov 128   ;;  %s523_s26 = smov 8  }
  0x1d   : > { %382 = dma.hbm_to_vmem [thread:$0]  (!%p380_p12), %s661_s1, 1024, %s107_s23, [#allocation3], %s522_s25, %s522_s25, %s523_s26  }
  0x1e   : > { %129 = sbr.rel (%p592_p10) target bundleno = 376 (0x178), region = 28 }
  0x23   : > { %498 = dma.done.wait (%p387_p9), [#allocation3], 1024  }
  0x24   : > { %500 = vsyncadd (%p387_p9), [#allocation3], 4294966272  ;;  %p150_p8 = scmp.lt.s32.totalorder %s564_s13, 1  ;;  %v524_v0 = vmov 0   ;;  %v525_v1 = vmov 0.0   ;;  %vm526_vm0 = vmmov 0   ;;  %v154_v11 = vlaneseq }
  0x25   : > { %428 = vset.pattern.permute.xlu0 %v524_v0  ;;  %354 = vmatprep.subr.mxu0 %v525_v1  ;;  %v170_v3 = vld [vmem:[#allocation2 + $0x38] sm:$0xff]  ;;  %v169_v4 = vld [vmem:[#allocation2 + $0x30] sm:$0xff]  ;;  %v168_v5 = vld [vmem:[#allocation2 + $0x28] sm:$0xff]  ;;  %vm171_vm1 = vcmask 523264   ;;  %s147_s6 = sand.u32 1, %s511_s10   ;;  %s342_s16 = sshll.u32 %s564_s13, 7 }
  0x26   : > { %s151_s29 = scalar_select %p150_p8, %s564_s13, 1  ;;  %370 = vmatprep.mubr.msk.f32.mxu0 %vm526_vm0, %v525_v1  ;;  %355 = vmatpush3.msra.mxu0 %v170_v3  ;;  %v167_v6 = vld [vmem:[#allocation2 + $0x20] sm:$0xff]  ;;  %v166_v7 = vld [vmem:[#allocation2 + $0x18] sm:$0xff]  ;;  %v165_v8 = vld [vmem:[#allocation2 + $0x10] sm:$0xff]  ;;  %v155_v12 = vand.u32 127, %v154_v11 }
  0x27   : > { %356 = vmatprep.subr.mxu0 %v525_v1  ;;  %v164_v9 = vld [vmem:[#allocation2 + $0x8] sm:$0xff]  ;;  %v163_v10 = vld [vmem:[#allocation2] sm:$0xff]  ;;  %s337_s7 = sshll.u32 %s147_s6, 3  ;;  %s621_s22 = scalar_lea.hbm %s662_s2, %s342_s16 }
  0x28   : > { %s338_s30 = sshll.u32 %s151_s29, 3  ;;  %357 = vmatpush3.msra.mxu0 %v169_v4  ;;  %s149_s8 = scalar_lea.vmem [#allocation5], %s337_s7 }
  0x29   : > { %s153_s5 = scalar_lea.vmem %s660_s0, %s338_s30  ;;  %358 = vmatprep.subr.mxu0 %v525_v1  ;;  %s260_s14 = sshll.u32 %s149_s8, 4  ;;  %s616_s14 = int_to_ptr.vmem [resolvable:$true] %s260_s14 }
  0x2a   : > { %v156_v2 = vld [vmem:[%s153_s5] sm:$0xff]  ;;  %359 = vmatpush3.msra.mxu0 %v168_v5  ;;  %s247_s23 = scalar_lea.sflag [#allocation4], %s147_s6  ;;  %s455_s24 = scalar_lea.vmem %s616_s14, 128 }
  0x2b   : > { %158 = vperm.xlu0 %428, %v156_v2   ;;  %360 = vmatprep.subr.mxu0 %v525_v1  ;;  %p456_p6 = scmp.ne.s32.totalorder %s616_s14, %s455_s24  ;;  %s527_s13 = smov [#allocation5]  }
  0x2c   : > { %361 = vmatpush3.msra.mxu0 %v167_v6  ;;  %s459_s25 = sshll.u32 %s527_s13, 4  ;;  %s460_s25 = int_to_ptr.vmem [resolvable:$false] %s459_s25 }
  0x2d   : > { %362 = vmatprep.subr.mxu0 %v525_v1  ;;  %p457_p9 = pnand %p456_p6, %p581_p5  ;;  %s461_s26 = scalar_lea.vmem %s460_s25, 256 }
  0x2e   : > { %363 = vmatpush3.msra.mxu0 %v166_v7  ;;  %p462_p11 = scmp.lt.s32.totalorder %s616_s14, %s460_s25  ;;  %p463_p12 = scmp.lt.s32.totalorder %s461_s26, %s455_s24 }
  0x2f   : > { %364 = vmatprep.subr.mxu0 %v525_v1  ;;  %p458_p10 = pneg %p457_p9 }
  0x30   : > { %365 = vmatpush3.msra.mxu0 %v165_v8  ;;  %p464_p13 = por %p463_p12, %p462_p11 }
  0x31   : > { %366 = vmatprep.subr.mxu0 %v525_v1 }
  0x32   : > { %367 = vmatpush3.msra.mxu0 %v164_v9  ;;  %p465_p0 = pnand %p464_p13, %p458_p10 }
  0x33   : > { %368 = vmatprep.subr.mxu0 %v525_v1 }
  0x34   : > { %369 = vmatpush3.msra.mxu0 %v163_v10 }
  0xa6   : > { %v159_v13 = vpop.permute.xlu0 %158 }
  0xa7   : > { %vm160_vm2 = vcmp.eq.s32.totalorder %v155_v12, %v159_v13 }
  0xa8   : > { %v339_v14 = vsel %vm160_vm2, 1.0, %v525_v1 }
  0xa9   : > { %371 = vmatmul.mubr.msk.f32.vlgmr.msra.gmra.mxu0 %vm171_vm1, %v339_v14 }
 0x169   : > { %v241_v15 = vpop.f32.mrf.mxu0 }
 0x16a   : > { %245 = vst [vmem:[%s149_s8] sm:$0xff] %v241_v15 }
 0x16b   : > { %v372_v16 = vpop.f32.mrf.mxu0 }
 0x16c   : > { %468 = shalt.err (!%p465_p0)
}
 0x16d   : > { %s469_s27 = scalar_lea.hbm %s621_s22, 128  ;;  %s473_s30 = scalar_lea.hbm %s662_s2, 256 }
 0x16e   : > { %p470_p1 = scmp.ne.s32.totalorder %s621_s22, %s469_s27  ;;  %p474_p4 = scmp.lt.s32.totalorder %s621_s22, %s662_s2 }
 0x16f   : > { %p475_p7 = scmp.lt.s32.totalorder %s473_s30, %s469_s27 }
 0x170   : > { %p471_p2 = pnand %p470_p1, %p581_p5 }
 0x171   : > { %p476_p8 = por %p475_p7, %p474_p4 }
 0x172   : > { %p472_p3 = pneg %p471_p2 }
 0x174   : > { %p477_p6 = pnand %p476_p8, %p472_p3 }
 0x176   : > { %480 = shalt.err (!%p477_p6)
}
 0x177   : > { %377 = dma.vmem_to_hbm [thread:$0]  (%p581_p5), %s616_s14, 128, %s621_s22, %s247_s23  }
 0x178 PF: > { %p389_p9 = scmp.ge.s32.totalorder %s519_s12, 2  ;;  %s272_s5 = sand.u32 1, %s507_s9  }
 0x179   : > { %p666_p10 = scmp.ne.s32.totalorder %s664_s20, 0  ;;  %s273_s6 = scalar_lea.sflag [#allocation4], %s272_s5 }
 0x17b   : > { %p384_p11 = pnand %p389_p9, %p666_p10 }
 0x17d   : > { %p385_p12 = pneg %p384_p11 }
 0x17f   : > { %502 = dma.done.wait (%p385_p12), %s273_s6, 128  }
 0x180   : > { %504 = vsyncadd (%p385_p12), %s273_s6, 4294967168  ;;  %p13_p13 = scmp.ge.s32.totalorder %s568_s15, 4   ;;  %s667_s9 = smov %s511_s10 }
 0x181   : > { %s668_s10 = smov %s515_s11  ;;  %s669_s11 = smov %s579_s18 }
 0x182   : > { %s670_s12 = smov %s568_s15  ;;  %15 = sbr.rel (!%p13_p13) target bundleno = 4 (0x4), region = 68 }
 0x187   :  { %278 = vsyncpa [#allocation3], 1 }
 0x188   :  { %280 = vsyncpa [#allocation3 + $0x1], 1 }
 0x189   :  { %281 = vsyncpa [#allocation4], 1 }
 0x18a   :  { %283 = vsyncpa [#allocation4 + $0x1], 1 }

</bundles_post_ra>
